<compile_context>
chip_gen: v6e
topology: v6e:2x2x1
jax: 0.10.0
libtpu: 0.0.40
codegen_flags: <defaults>
</compile_context>

<pallas_src>
import functools

import jax
import jax.numpy as jnp
from jax import lax
from jax.experimental import pallas as pl
from jax.experimental.pallas import tpu as pltpu

EPS = 1e-5


def _bn_train(h, gamma, beta):
    """BatchNorm1d, training mode, applied as one per-element mul + add.

    Per-channel scale/shift are computed once on [1, H] rows (batch mean,
    biased batch variance, eps=1e-5), matching torch BN in .train().
    """
    mean = jnp.mean(h, axis=0, keepdims=True)
    var = jnp.mean((h - mean) ** 2, axis=0, keepdims=True)
    scale = gamma * lax.rsqrt(var + EPS)          # [1, H]
    shift = beta - mean * scale                   # [1, H]
    return h * scale + shift


def mlp_drift_kernel(trans_ref, act_ref, w_t_ref, w_e_ref, w23_ref, vec_ref,
                     out_ref):
    """Fused forward.

    trans_ref: [B, 2*obs_dim]            float32 transitions (ot | delta_ot)
    act_ref  : [B, 1]                    int32 discrete action ids
    w_t_ref  : [2*obs_dim, 2*H]          fc1 | fc_skip transition-facing block
    w_e_ref  : [num_actions, 2*H]        embedding-folded action-facing block
    w23_ref  : [2, H, H]                 w2 stacked with w3
    vec_ref  : [8, H] rows = b3, g1, be1, g2, be2, w4_row, b4_bcast, pad
    out_ref  : [1, B]                    lane-dense result row
    """
    f32 = jnp.float32
    H = w23_ref.shape[-1]
    B = trans_ref.shape[0]
    A = w_e_ref.shape[0]

    # Packed per-channel vectors (single [8, H] operand).
    b3 = vec_ref[0:1, :]
    gamma1, beta1 = vec_ref[1:2, :], vec_ref[2:3, :]
    gamma2, beta2 = vec_ref[3:4, :], vec_ref[4:5, :]
    w4_row = vec_ref[5:6, :]
    b4 = vec_ref[6:7, 0:1]                                     # [1, 1]

    # One-hot built in-kernel: no wrapper-side one_hot/concat XLA ops.
    onehot = (act_ref[...] ==
              lax.broadcasted_iota(jnp.int32, (B, A), 1)).astype(f32)

    # fc1 + fc_skip in one lane-adjacent [B, 2H] result; embedding folded.
    h = (jnp.dot(trans_ref[...], w_t_ref[...], preferred_element_type=f32) +
         jnp.dot(onehot, w_e_ref[...], preferred_element_type=f32))
    h1 = h[:, :H]        # fc1 pre-activation   (b1 cancels inside BN1)
    h_skip = h[:, H:]    # fc_skip contribution (bskip cancels inside BN2)

    h1 = jnp.maximum(_bn_train(h1, gamma1, beta1), 0.0)

    # b2 also cancels inside BN2 (constant per channel), so it is omitted.
    h2 = jnp.dot(h1, w23_ref[0], preferred_element_type=f32) + h_skip
    h2 = jnp.maximum(_bn_train(h2, gamma2, beta2), 0.0)

    h3 = jnp.maximum(
        jnp.dot(h2, w23_ref[1], preferred_element_type=f32) + b3, 0.0)

    # fc4 as a VPU multiply + lane reduce (no N=1 MXU pass); lane-dense store.
    r = jnp.sum(h3 * w4_row, axis=1)                           # [B]
    out_ref[...] = r[None, :] + b4


def mlp_drift_detector_fwd(x, fused, *, obs_dim, num_actions):
    """x: [B, 2*obs_dim + 1] float32; last column holds the discrete action id."""
    del num_actions
    B = x.shape[0]
    transition = x[:, : 2 * obs_dim].astype(jnp.float32)       # [B, 2*obs_dim]
    actions = x[:, -1:].astype(jnp.int32)                      # [B, 1]

    vmem = pl.BlockSpec(memory_space=pltpu.MemorySpace.VMEM)
    out = pl.pallas_call(
        mlp_drift_kernel,
        out_shape=jax.ShapeDtypeStruct((1, B), jnp.float32),
        in_specs=[vmem] * 6,
        out_specs=vmem,
        compiler_params=pltpu.CompilerParams(
            vmem_limit_bytes=32 * 1024 * 1024),   # fits v7x's 64 MiB physical
    )(transition, actions, fused["w_t"], fused["w_e"], fused["w23"],
      fused["vecs"])
    return out.reshape(B, 1)


def make_params(key, *, obs_dim, num_actions, action_embed_dim, hidden_dim):
    """Deterministic synthetic parameters (weights stored as [in, out])."""
    d_in_trans = 2 * obs_dim
    d_in_emb = action_embed_dim
    ks = jax.random.split(key, 13)
    u = lambda k, shape, s=0.1: jax.random.uniform(
        k, shape, jnp.float32, minval=-s, maxval=s)
    return {
        "emb": jax.random.normal(ks[0], (num_actions, action_embed_dim),
                                 jnp.float32),
        "w1_t": u(ks[1], (d_in_trans, hidden_dim)),
        "w1_e": u(ks[2], (d_in_emb, hidden_dim)),
        "b1": u(ks[3], (1, hidden_dim)),
        "wskip_t": u(ks[4], (d_in_trans, hidden_dim)),
        "wskip_e": u(ks[5], (d_in_emb, hidden_dim)),
        "bskip": u(ks[6], (1, hidden_dim)),
        "w2": u(ks[7], (hidden_dim, hidden_dim)),
        "b2": u(ks[8], (1, hidden_dim)),
        "w3": u(ks[9], (hidden_dim, hidden_dim)),
        "b3": u(ks[10], (1, hidden_dim)),
        "w4": u(ks[11], (hidden_dim, 1)),
        "b4": u(ks[12], (1, 1)),
        "gamma1": jnp.ones((1, hidden_dim), jnp.float32),
        "beta1": jnp.zeros((1, hidden_dim), jnp.float32),
        "gamma2": jnp.ones((1, hidden_dim), jnp.float32),
        "beta2": jnp.zeros((1, hidden_dim), jnp.float32),
    }


def fuse_params(params, dtype=jnp.float32):
    """Build the 4 packed weight operands from the natural parameterization.

    `dtype=jnp.bfloat16` halves weight DMA on v6e/v7x (cast activations at the
    dot boundaries in that case); the demo keeps float32 for strict checking.
    """
    hidden = params["w2"].shape[0]
    # Fold the embedding table into the action-facing first-layer weights.
    e1 = params["emb"] @ params["w1_e"]            # [A, H]
    es = params["emb"] @ params["wskip_e"]         # [A, H]
    w_t = jnp.concatenate([params["w1_t"], params["wskip_t"]], axis=1)
    w_e = jnp.concatenate([e1, es], axis=1)        # [A, 2H]

    w23 = jnp.stack([params["w2"], params["w3"]], axis=0)      # [2, H, H]

    # b1 / bskip / b2 are NOT packed: they cancel inside training-mode BN.
    vecs = jnp.concatenate([
        params["b3"],
        params["gamma1"], params["beta1"],
        params["gamma2"], params["beta2"],
        params["w4"].T,                                        # [1, H]
        jnp.broadcast_to(params["b4"], (1, hidden)),
        jnp.zeros((1, hidden), jnp.float32),                   # pad to 8 rows
    ], axis=0)                                                 # [8, H]

    return {"w_t": w_t.astype(dtype), "w_e": w_e.astype(dtype),
            "w23": w23.astype(dtype), "vecs": vecs.astype(jnp.float32)}


def reference_fwd(x, params, *, obs_dim, num_actions):
    """Pure-JAX reference mirroring the PyTorch forward (training-mode BN),
    including all bias terms (checks the in-kernel BN cancellation)."""
    del num_actions
    transition = x[:, : 2 * obs_dim].astype(jnp.float32)
    action = x[:, -1].astype(jnp.int32)
    emb = params["emb"][action]                                # gather
    h1 = transition @ params["w1_t"] + emb @ params["w1_e"] + params["b1"]
    hs = (transition @ params["wskip_t"] + emb @ params["wskip_e"]
          + params["bskip"])
    h1 = jnp.maximum(_bn_train(h1, params["gamma1"], params["beta1"]), 0.0)
    h2 = h1 @ params["w2"] + params["b2"] + hs
    h2 = jnp.maximum(_bn_train(h2, params["gamma2"], params["beta2"]), 0.0)
    h3 = jnp.maximum(h2 @ params["w3"] + params["b3"], 0.0)
    return h3 @ params["w4"] + params["b4"]


if __name__ == "__main__":
    # Small shapes consistent with the module (discrete_action=True path).
    # hidden_dim=128 keeps intermediates lane-dense; the kernel itself scales
    # by raising B in the single whole-batch block.
    B = 8
    OBS_DIM = 8
    NUM_ACTIONS = 4
    ACTION_EMBED_DIM = 8
    HIDDEN_DIM = 128

    key = jax.random.PRNGKey(0)
    kx, ka, kp = jax.random.split(key, 3)

    transition = jax.random.normal(kx, (B, 2 * OBS_DIM), jnp.float32)
    actions = jax.random.randint(ka, (B, 1), 0, NUM_ACTIONS).astype(jnp.float32)
    x = jnp.concatenate([transition, actions], axis=-1)        # [B, 2*obs+1]

    params = make_params(kp, obs_dim=OBS_DIM, num_actions=NUM_ACTIONS,
                         action_embed_dim=ACTION_EMBED_DIM,
                         hidden_dim=HIDDEN_DIM)
    fused = fuse_params(params)

    fwd = functools.partial(mlp_drift_detector_fwd,
                            obs_dim=OBS_DIM, num_actions=NUM_ACTIONS)
    out = jax.block_until_ready(fwd(x, fused))

    ref = reference_fwd(x, params, obs_dim=OBS_DIM, num_actions=NUM_ACTIONS)
    assert out.shape == (B, 1)
    assert jnp.allclose(out, ref, atol=1e-4, rtol=1e-4), (out, ref)

    print("KERNEL_OK")
</pallas_src>

<mosaic_0001>
module attributes {stable_mosaic.version = 11 : i64} {
  func.func @mlp_drift_kernel(%arg0: memref<8x16xf32, #tpu.memory_space<vmem>>, %arg1: memref<8x1xi32, #tpu.memory_space<vmem>>, %arg2: memref<16x256xf32, #tpu.memory_space<vmem>>, %arg3: memref<4x256xf32, #tpu.memory_space<vmem>>, %arg4: memref<2x128x128xf32, #tpu.memory_space<vmem>>, %arg5: memref<8x128xf32, #tpu.memory_space<vmem>>, %arg6: memref<1x8xf32, #tpu.memory_space<vmem>>) attributes {dimension_semantics = [], scalar_prefetch = 0 : i64, scratch_operands = 0 : i64, tpu.core_type = #tpu.core_type<tc>} {
    %c0 = arith.constant 0 : index
    %c0_0 = arith.constant 0 : index
    %0 = vector.load %arg5[%c0, %c0_0] : memref<8x128xf32, #tpu.memory_space<vmem>>, vector<1x128xf32>
    %c1 = arith.constant 1 : index
    %c0_1 = arith.constant 0 : index
    %1 = vector.load %arg5[%c1, %c0_1] : memref<8x128xf32, #tpu.memory_space<vmem>>, vector<1x128xf32>
    %c2 = arith.constant 2 : index
    %c0_2 = arith.constant 0 : index
    %2 = vector.load %arg5[%c2, %c0_2] : memref<8x128xf32, #tpu.memory_space<vmem>>, vector<1x128xf32>
    %c3 = arith.constant 3 : index
    %c0_3 = arith.constant 0 : index
    %3 = vector.load %arg5[%c3, %c0_3] : memref<8x128xf32, #tpu.memory_space<vmem>>, vector<1x128xf32>
    %c4 = arith.constant 4 : index
    %c0_4 = arith.constant 0 : index
    %4 = vector.load %arg5[%c4, %c0_4] : memref<8x128xf32, #tpu.memory_space<vmem>>, vector<1x128xf32>
    %c5 = arith.constant 5 : index
    %c0_5 = arith.constant 0 : index
    %5 = vector.load %arg5[%c5, %c0_5] : memref<8x128xf32, #tpu.memory_space<vmem>>, vector<1x128xf32>
    %c6 = arith.constant 6 : index
    %c0_6 = arith.constant 0 : index
    %6 = vector.load %arg5[%c6, %c0_6] : memref<8x128xf32, #tpu.memory_space<vmem>>, vector<1x1xf32>
    %c0_7 = arith.constant 0 : index
    %c0_8 = arith.constant 0 : index
    %7 = vector.load %arg1[%c0_7, %c0_8] : memref<8x1xi32, #tpu.memory_space<vmem>>, vector<8x1xi32>
    %8 = tpu.iota {dimensions = array<i32: 1>} : vector<8x4xi32>
    %9 = vector.broadcast %7 : vector<8x1xi32> to vector<8x4xi32>
    %10 = arith.cmpi eq, %9, %8 : vector<8x4xi32>
    %11 = arith.extui %10 : vector<8x4xi1> to vector<8x4xi32>
    %12 = arith.sitofp %11 : vector<8x4xi32> to vector<8x4xf32>
    %c0_9 = arith.constant 0 : index
    %c0_10 = arith.constant 0 : index
    %13 = vector.load %arg0[%c0_9, %c0_10] : memref<8x16xf32, #tpu.memory_space<vmem>>, vector<8x16xf32>
    %c0_11 = arith.constant 0 : index
    %c0_12 = arith.constant 0 : index
    %14 = vector.load %arg2[%c0_11, %c0_12] : memref<16x256xf32, #tpu.memory_space<vmem>>, vector<16x256xf32>
    %cst = arith.constant dense<0.000000e+00> : vector<8x256xf32>
    %15 = tpu.matmul %13, %14, %cst {dimension_numbers = #tpu.dot_dimension_numbers<[1], [0], [0], [1], [0, 0, 1, 1], [], []>} : vector<8x16xf32>, vector<16x256xf32>, vector<8x256xf32> -> vector<8x256xf32>
    %c0_13 = arith.constant 0 : index
    %c0_14 = arith.constant 0 : index
    %16 = vector.load %arg3[%c0_13, %c0_14] : memref<4x256xf32, #tpu.memory_space<vmem>>, vector<4x256xf32>
    %cst_15 = arith.constant dense<0.000000e+00> : vector<8x256xf32>
    %17 = tpu.matmul %12, %16, %cst_15 {dimension_numbers = #tpu.dot_dimension_numbers<[1], [0], [0], [1], [0, 0, 1, 1], [], []>} : vector<8x4xf32>, vector<4x256xf32>, vector<8x256xf32> -> vector<8x256xf32>
    %18 = arith.addf %15, %17 : vector<8x256xf32>
    %19 = vector.extract_strided_slice %18 {offsets = [0, 0], sizes = [8, 128], strides = [1, 1]} : vector<8x256xf32> to vector<8x128xf32>
    %20 = vector.extract_strided_slice %18 {offsets = [0, 128], sizes = [8, 128], strides = [1, 1]} : vector<8x256xf32> to vector<8x128xf32>
    %cst_16 = arith.constant dense<0.000000e+00> : vector<128xf32>
    %21 = vector.multi_reduction <add>, %19, %cst_16 [0] : vector<8x128xf32> to vector<128xf32>
    %22 = vector.shape_cast %21 : vector<128xf32> to vector<1x128xf32>
    %cst_17 = arith.constant 8.000000e+00 : f32
    %23 = vector.broadcast %cst_17 : f32 to vector<1x128xf32>
    %24 = arith.divf %22, %23 : vector<1x128xf32>
    %25 = vector.broadcast %24 : vector<1x128xf32> to vector<8x128xf32>
    %26 = arith.subf %19, %25 : vector<8x128xf32>
    %27 = arith.mulf %26, %26 : vector<8x128xf32>
    %cst_18 = arith.constant dense<0.000000e+00> : vector<128xf32>
    %28 = vector.multi_reduction <add>, %27, %cst_18 [0] : vector<8x128xf32> to vector<128xf32>
    %29 = vector.shape_cast %28 : vector<128xf32> to vector<1x128xf32>
    %cst_19 = arith.constant 8.000000e+00 : f32
    %30 = vector.broadcast %cst_19 : f32 to vector<1x128xf32>
    %31 = arith.divf %29, %30 : vector<1x128xf32>
    %cst_20 = arith.constant 9.99999974E-6 : f32
    %32 = vector.broadcast %cst_20 : f32 to vector<1x128xf32>
    %33 = arith.addf %31, %32 : vector<1x128xf32>
    %34 = math.rsqrt %33 : vector<1x128xf32>
    %35 = arith.mulf %1, %34 : vector<1x128xf32>
    %36 = arith.mulf %24, %35 : vector<1x128xf32>
    %37 = arith.subf %2, %36 : vector<1x128xf32>
    %38 = vector.broadcast %35 : vector<1x128xf32> to vector<8x128xf32>
    %39 = arith.mulf %19, %38 : vector<8x128xf32>
    %40 = vector.broadcast %37 : vector<1x128xf32> to vector<8x128xf32>
    %41 = arith.addf %39, %40 : vector<8x128xf32>
    %cst_21 = arith.constant 0.000000e+00 : f32
    %42 = vector.broadcast %cst_21 : f32 to vector<8x128xf32>
    %43 = arith.maximumf %41, %42 : vector<8x128xf32>
    %c0_22 = arith.constant 0 : index
    %c0_23 = arith.constant 0 : index
    %c0_24 = arith.constant 0 : index
    %44 = vector.load %arg4[%c0_22, %c0_23, %c0_24] : memref<2x128x128xf32, #tpu.memory_space<vmem>>, vector<1x128x128xf32>
    %45 = vector.shape_cast %44 : vector<1x128x128xf32> to vector<128x128xf32>
    %cst_25 = arith.constant dense<0.000000e+00> : vector<8x128xf32>
    %46 = tpu.matmul %43, %45, %cst_25 {dimension_numbers = #tpu.dot_dimension_numbers<[1], [0], [0], [1], [0, 0, 1, 1], [], []>} : vector<8x128xf32>, vector<128x128xf32>, vector<8x128xf32> -> vector<8x128xf32>
    %47 = arith.addf %46, %20 : vector<8x128xf32>
    %cst_26 = arith.constant dense<0.000000e+00> : vector<128xf32>
    %48 = vector.multi_reduction <add>, %47, %cst_26 [0] : vector<8x128xf32> to vector<128xf32>
    %49 = vector.shape_cast %48 : vector<128xf32> to vector<1x128xf32>
    %cst_27 = arith.constant 8.000000e+00 : f32
    %50 = vector.broadcast %cst_27 : f32 to vector<1x128xf32>
    %51 = arith.divf %49, %50 : vector<1x128xf32>
    %52 = vector.broadcast %51 : vector<1x128xf32> to vector<8x128xf32>
    %53 = arith.subf %47, %52 : vector<8x128xf32>
    %54 = arith.mulf %53, %53 : vector<8x128xf32>
    %cst_28 = arith.constant dense<0.000000e+00> : vector<128xf32>
    %55 = vector.multi_reduction <add>, %54, %cst_28 [0] : vector<8x128xf32> to vector<128xf32>
    %56 = vector.shape_cast %55 : vector<128xf32> to vector<1x128xf32>
    %cst_29 = arith.constant 8.000000e+00 : f32
    %57 = vector.broadcast %cst_29 : f32 to vector<1x128xf32>
    %58 = arith.divf %56, %57 : vector<1x128xf32>
    %cst_30 = arith.constant 9.99999974E-6 : f32
    %59 = vector.broadcast %cst_30 : f32 to vector<1x128xf32>
    %60 = arith.addf %58, %59 : vector<1x128xf32>
    %61 = math.rsqrt %60 : vector<1x128xf32>
    %62 = arith.mulf %3, %61 : vector<1x128xf32>
    %63 = arith.mulf %51, %62 : vector<1x128xf32>
    %64 = arith.subf %4, %63 : vector<1x128xf32>
    %65 = vector.broadcast %62 : vector<1x128xf32> to vector<8x128xf32>
    %66 = arith.mulf %47, %65 : vector<8x128xf32>
    %67 = vector.broadcast %64 : vector<1x128xf32> to vector<8x128xf32>
    %68 = arith.addf %66, %67 : vector<8x128xf32>
    %cst_31 = arith.constant 0.000000e+00 : f32
    %69 = vector.broadcast %cst_31 : f32 to vector<8x128xf32>
    %70 = arith.maximumf %68, %69 : vector<8x128xf32>
    %c1_32 = arith.constant 1 : index
    %c0_33 = arith.constant 0 : index
    %c0_34 = arith.constant 0 : index
    %71 = vector.load %arg4[%c1_32, %c0_33, %c0_34] : memref<2x128x128xf32, #tpu.memory_space<vmem>>, vector<1x128x128xf32>
    %72 = vector.shape_cast %71 : vector<1x128x128xf32> to vector<128x128xf32>
    %cst_35 = arith.constant dense<0.000000e+00> : vector<8x128xf32>
    %73 = tpu.matmul %70, %72, %cst_35 {dimension_numbers = #tpu.dot_dimension_numbers<[1], [0], [0], [1], [0, 0, 1, 1], [], []>} : vector<8x128xf32>, vector<128x128xf32>, vector<8x128xf32> -> vector<8x128xf32>
    %74 = vector.broadcast %0 : vector<1x128xf32> to vector<8x128xf32>
    %75 = arith.addf %73, %74 : vector<8x128xf32>
    %cst_36 = arith.constant 0.000000e+00 : f32
    %76 = vector.broadcast %cst_36 : f32 to vector<8x128xf32>
    %77 = arith.maximumf %75, %76 : vector<8x128xf32>
    %78 = vector.broadcast %5 : vector<1x128xf32> to vector<8x128xf32>
    %79 = arith.mulf %77, %78 : vector<8x128xf32>
    %cst_37 = arith.constant dense<0.000000e+00> : vector<8xf32>
    %80 = vector.multi_reduction <add>, %79, %cst_37 [1] : vector<8x128xf32> to vector<8xf32>
    %81 = vector.shape_cast %80 : vector<8xf32> to vector<1x8xf32>
    %82 = vector.broadcast %6 : vector<1x1xf32> to vector<1x8xf32>
    %83 = arith.addf %81, %82 : vector<1x8xf32>
    %c0_38 = arith.constant 0 : index
    %c0_39 = arith.constant 0 : index
    %84 = vector.load %arg6[%c0_38, %c0_39] : memref<1x8xf32, #tpu.memory_space<vmem>>, vector<1x8xf32>
    tpu.vector_store %arg6[%c0_38, %c0_39], %83 {strides = array<i32>} : memref<1x8xf32, #tpu.memory_space<vmem>>, vector<1x8xf32>,
    return
  }
}

</mosaic_0001>

<bundles_post_ra>
// kernel: tpu_custom_call.1
= control target key start
LH: loop header
LB: loop body
LE: loop exit
PB: predicated region body
PF: predicated region fallthrough
CT: control target
= control target key end

     0   :  { %11 = vsyncpa [#allocation3], 0  ;;  %s883_s0 = inlined_call_operand.vmem [shape: f32[8,16], index: 0, kind: input, shape index: {}]   ;;  %s884_s1 = inlined_call_operand.vmem [shape: s32[8,1], index: 1, kind: input, shape index: {}]   ;;  %s885_s2 = inlined_call_operand.hbm [shape: f32[16,256], index: 2, kind: input, shape index: {}]   ;;  %s886_s3 = inlined_call_operand.hbm [shape: f32[4,256], index: 3, kind: input, shape index: {}]   ;;  %s887_s4 = inlined_call_operand.hbm [shape: f32[2,128,128], index: 4, kind: input, shape index: {}]   ;;  %s888_s5 = inlined_call_operand.vmem [shape: f32[8,128], index: 5, kind: input, shape index: {}]   ;;  %s889_s6 = inlined_call_operand.hbm [shape: f32[1,8], index: 6, kind: output, shape index: {}]  }
   0x1   :  { %12 = vsyncpa [#allocation6], 0 }
   0x2   :  { %13 = vsyncpa [#allocation4], 0  ;;  %s744_s21 = smov [#allocation5]   ;;  %s745_s23 = smov [#allocation2]  }
   0x3   :  { %s36_s22 = sshll.u32 %s744_s21, 4  ;;  %s23_s24 = sshll.u32 %s745_s23, 4  ;;  %s37_s22 = int_to_ptr.vmem [resolvable:$true] %s36_s22  ;;  %s24_s24 = int_to_ptr.vmem [resolvable:$true] %s23_s24 }
   0x4   :  { %s666_s25 = scalar_lea.vmem %s37_s22, 128  ;;  %p671_p1 = scmp.lt.s32.totalorder %s37_s22, %s37_s22 }
   0x5   :  { %p667_p0 = scmp.ne.s32.totalorder %s37_s22, %s666_s25  ;;  %p672_p2 = scmp.lt.s32.totalorder %s666_s25, %s666_s25 }
   0x7   :  { %p673_p3 = por %p672_p2, %p671_p1 }
   0x9   :  { %p674_p4 = pnand %p673_p3, %p667_p0 }
   0xb   :  { %677 = shalt.err (!%p674_p4)
}
   0xc   :  { %39 = dma.hbm_to_vmem [thread:$0]  %s886_s3, 128, %s37_s22, [#allocation6]  }
   0xd   :  { %s686_s28 = scalar_lea.vmem %s24_s24, 512  ;;  %p691_p6 = scmp.lt.s32.totalorder %s24_s24, %s24_s24 }
   0xe   :  { %p687_p5 = scmp.ne.s32.totalorder %s24_s24, %s686_s28  ;;  %p692_p7 = scmp.lt.s32.totalorder %s686_s28, %s686_s28 }
  0x10   :  { %p693_p8 = por %p692_p7, %p691_p6 }
  0x12   :  { %p694_p9 = pnand %p693_p8, %p687_p5 }
  0x14   :  { %697 = shalt.err (!%p694_p9)
}
  0x15   :  { %s746_s29 = smov 256   ;;  %s747_s30 = smov 16  }
  0x16   :  { %29 = dma.hbm_to_vmem [thread:$0]  %s885_s2, 512, %s24_s24, [#allocation3], %s746_s29, %s746_s29, %s747_s30  }
  0x17   :  { %s748_s9 = smov [#allocation7]  }
  0x18   :  { %s45_s10 = sshll.u32 %s748_s9, 4  ;;  %s46_s10 = int_to_ptr.vmem [resolvable:$true] %s45_s10 }
  0x19   :  { %s706_s11 = scalar_lea.vmem %s46_s10, 4096  ;;  %p711_p11 = scmp.lt.s32.totalorder %s46_s10, %s46_s10 }
  0x1a   :  { %p707_p10 = scmp.ne.s32.totalorder %s46_s10, %s706_s11  ;;  %p712_p12 = scmp.lt.s32.totalorder %s706_s11, %s706_s11 }
  0x1c   :  { %p713_p13 = por %p712_p12, %p711_p11 }
  0x1e   :  { %p714_p0 = pnand %p713_p13, %p707_p10 }
  0x20   :  { %717 = shalt.err (!%p714_p0)
}
  0x21   :  { %s749_s3 = smov 128   ;;  %s750_s12 = smov 8  }
  0x22   :  { %51 = dma.hbm_to_vmem [thread:$0]  %s887_s4, 4096, %s46_s10, [#allocation6], %s749_s3, %s749_s3, %s750_s12  }
  0x23   :  { %738 = dma.done.wait [#allocation3], 512  }
  0x24   :  { %739 = vsyncadd [#allocation3], 4294966784 }
  0x25   :  { %740 = dma.done.wait [#allocation6], 4224  }
  0x26   :  { %741 = vsyncadd [#allocation6], 4294963072  ;;  %v751_v0 = vmov 0   ;;  %v752_v1 = vmov 0.0   ;;  %v70_v2 = vld [vmem:[%s884_s1] sm:$0xff]  ;;  %v83_v3 = vld [vmem:[#allocation2 + $0x18] sm:$0xff]  ;;  %v71_v10 = vlaneseq }
  0x27   :  { %651 = vset.pattern.permute.xlu0 %v751_v0  ;;  %235 = vmatprep.mubr.f32.mxu1 %v752_v1  ;;  %v82_v4 = vld [vmem:[#allocation2 + $0x10] sm:$0xff]  ;;  %v81_v5 = vld [vmem:[#allocation2 + $0x8] sm:$0xff]  ;;  %v80_v6 = vld [vmem:[#allocation2] sm:$0xff]  ;;  %vm91_vm0 = vcmask 1043456   ;;  %vm167_vm1 = vcmask 130048   ;;  %vm87_vm2 = vcmask 31744  }
  0x28   :  { %160 = vmatprep.mubr.f32.mxu0 %v752_v1  ;;  %652 = vset.pattern.permute.xlu1 %v751_v0  ;;  %v84_v7 = vld [vmem:[#allocation5] sm:$0xff]  ;;  %v810_v11 = vand.u32 127, %v71_v10  ;;  %v289_v15 = vld [vmem:[#allocation7 + $0x70] sm:$0xff]  ;;  %v288_v16 = vld [vmem:[#allocation7 + $0x68] sm:$0xff]  ;;  %vm753_vm4 = vmmov 0   ;;  %v832_v50 = vshrl.u32 %v71_v10, 7 }
  0x29   :  { %74 = vperm.xlu0 %651, %v70_v2   ;;  %199 = vmatprep.subr.mxu1 %v83_v3  ;;  %v86_v8 = vcombine.high %v84_v7, %v84_v7  ;;  %v79_v9 = vld [vmem:[%s883_s0] sm:$0xff]  ;;  %v287_v17 = vld [vmem:[#allocation7 + $0x60] sm:$0xff]  ;;  %v285_v19 = vld [vmem:[#allocation7 + $0x50] sm:$0xff]  ;;  %s754_s29 = smov [#allocation8]   ;;  %vm511_vm5 = vcmask 57344  }
  0x2a   :  { %200 = vmatpush1.msra.mxu1 %v82_v4  ;;  %v290_v14 = vld [vmem:[#allocation7 + $0x78] sm:$0xff]  ;;  %v284_v20 = vld [vmem:[#allocation7 + $0x48] sm:$0xff]  ;;  %v283_v21 = vld [vmem:[#allocation7 + $0x40] sm:$0xff]  ;;  %v838_v52 = vsub.s32 0, %v832_v50  ;;  %s519_s30 = sshll.u32 %s754_s29, 4  ;;  %s520_s30 = int_to_ptr.vmem [resolvable:$true] %s519_s30 }
  0x2b   :  { %201 = vmatprep.subr.mxu1 %v81_v5  ;;  %530 = vmatprep.subr.msk.mxu0 %vm91_vm0, %v86_v8  ;;  %v286_v18 = vld [vmem:[#allocation7 + $0x58] sm:$0xff]  ;;  %v281_v23 = vld [vmem:[#allocation7 + $0x30] sm:$0xff]  ;;  %v280_v24 = vld [vmem:[#allocation7 + $0x28] sm:$0xff]  ;;  %s722_s7 = scalar_lea.vmem %s520_s30, 32  ;;  %p723_p2 = scmp.lt.s32.totalorder %s520_s30, %s520_s30 }
  0x2c   :  { %202 = vmatpush1.msra.mxu1 %v80_v6  ;;  %531 = vmatpush1.msk.msra.mxu0 %vm91_vm0, %v84_v7  ;;  %v282_v22 = vld [vmem:[#allocation7 + $0x38] sm:$0xff]  ;;  %v279_v25 = vld [vmem:[#allocation7 + $0x20] sm:$0xff]  ;;  %v277_v27 = vld [vmem:[#allocation7 + $0x10] sm:$0xff] }
  0x2d   :  { %533 = vmatmul.mubr.msk.f32.vlgmr.msra.gmra.mxu1 %vm167_vm1, %v79_v9  ;;  %570 = vmatprep.subr.mxu0 %v752_v1  ;;  %v278_v26 = vld [vmem:[#allocation7 + $0x18] sm:$0xff]  ;;  %v276_v28 = vld [vmem:[#allocation7 + $0x8] sm:$0xff]  ;;  %v275_v29 = vld [vmem:[#allocation7] sm:$0xff] }
  0x2e   :  { %605 = vmatprep.subr.mxu1 %v752_v1  ;;  %637 = vmatprep.mubr.msk.f32.mxu1 %vm753_vm4, %v752_v1  ;;  %v64_v51 = vld [vmem:[%s888_s5 + $0x1] sm:$0x1]  ;;  %v65_v55 = vld [vmem:[%s888_s5 + $0x2] sm:$0x1]  ;;  %v408_v0 = vld [vmem:[#allocation7 + $0xf0] sm:$0xff] }
  0x2f   :  { %v409_v63 = vld [vmem:[#allocation7 + $0xf8] sm:$0xff]  ;;  %v407_v2 = vld [vmem:[#allocation7 + $0xe8] sm:$0xff]  ;;  %v406_v3 = vld [vmem:[#allocation7 + $0xe0] sm:$0xff] }
  0x30   :  { %606 = vmatpush3.msra.mxu1 %v409_v63  ;;  %v405_v4 = vld [vmem:[#allocation7 + $0xd8] sm:$0xff]  ;;  %v404_v5 = vld [vmem:[#allocation7 + $0xd0] sm:$0xff]  ;;  %v403_v6 = vld [vmem:[#allocation7 + $0xc8] sm:$0xff] }
  0x31   :  { %607 = vmatprep.subr.mxu1 %v752_v1  ;;  %v402_v7 = vld [vmem:[#allocation7 + $0xc0] sm:$0xff]  ;;  %v401_v8 = vld [vmem:[#allocation7 + $0xb8] sm:$0xff]  ;;  %v400_v9 = vld [vmem:[#allocation7 + $0xb0] sm:$0xff] }
  0x32   :  { %608 = vmatpush3.msra.mxu1 %v408_v0  ;;  %v399_v10 = vld [vmem:[#allocation7 + $0xa8] sm:$0xff]  ;;  %v508_v0 = vsub.s32 %v810_v11, %v832_v50 }
  0x33   :  { %609 = vmatprep.subr.mxu1 %v752_v1 }
  0x34   :  { %610 = vmatpush3.msra.mxu1 %v407_v2 }
  0x35   :  { %611 = vmatprep.subr.mxu1 %v752_v1 }
  0x36   :  { %612 = vmatpush3.msra.mxu1 %v406_v3 }
  0x37   :  { %613 = vmatprep.subr.mxu1 %v752_v1 }
  0x38   :  { %614 = vmatpush3.msra.mxu1 %v405_v4 }
  0x39   :  { %615 = vmatprep.subr.mxu1 %v752_v1 }
  0x3a   :  { %616 = vmatpush3.msra.mxu1 %v404_v5 }
  0x3b   :  { %617 = vmatprep.subr.mxu1 %v752_v1 }
  0x3c   :  { %618 = vmatpush3.msra.mxu1 %v403_v6 }
  0x3d   :  { %619 = vmatprep.subr.mxu1 %v752_v1 }
  0x3e   :  { %620 = vmatpush3.msra.mxu1 %v402_v7 }
  0x3f   :  { %621 = vmatprep.subr.mxu1 %v752_v1 }
  0x40   :  { %622 = vmatpush3.msra.mxu1 %v401_v8 }
  0x41   :  { %623 = vmatprep.subr.mxu1 %v752_v1 }
  0x42   :  { %624 = vmatpush3.msra.mxu1 %v400_v9 }
  0x43   :  { %625 = vmatprep.subr.mxu1 %v752_v1 }
  0x44   :  { %626 = vmatpush3.msra.mxu1 %v399_v10 }
  0x45   :  { %627 = vmatprep.subr.mxu1 %v752_v1 }
  0xa4   :  { %v75_v12 = vpop.permute.xlu0 %74 }
  0xa5   :  { %vm76_vm3 = vcmp.eq.s32.totalorder %v75_v12, %v810_v11  ;;  %v398_v12 = vld [vmem:[#allocation7 + $0xa0] sm:$0xff] }
  0xa6   :  { %v529_v13 = vsel %vm76_vm3, 1.0, %v752_v1  ;;  %628 = vmatpush3.msra.mxu1 %v398_v12 }
  0xa7   :  { %532 = vmatmul.mubr.msk.f32.vlgmr.msra.gmra.mxu0 %vm87_vm2, %v529_v13  ;;  %629 = vmatprep.subr.mxu1 %v752_v1  ;;  %v397_v13 = vld [vmem:[#allocation7 + $0x98] sm:$0xff] }
  0xa8   :  { %571 = vmatpush3.msra.mxu0 %v290_v14  ;;  %602 = vmatprep.mubr.msk.f32.mxu0 %vm753_vm4, %v752_v1  ;;  %v396_v14 = vld [vmem:[#allocation7 + $0x90] sm:$0xff] }
  0xa9   :  { %572 = vmatprep.subr.mxu0 %v752_v1  ;;  %630 = vmatpush3.msra.mxu1 %v397_v13 }
  0xaa   :  { %573 = vmatpush3.msra.mxu0 %v289_v15  ;;  %631 = vmatprep.subr.mxu1 %v752_v1  ;;  %v395_v15 = vld [vmem:[#allocation7 + $0x88] sm:$0xff] }
  0xab   :  { %574 = vmatprep.subr.mxu0 %v752_v1  ;;  %632 = vmatpush3.msra.mxu1 %v396_v14 }
  0xac   :  { %575 = vmatpush3.msra.mxu0 %v288_v16  ;;  %633 = vmatprep.subr.mxu1 %v752_v1  ;;  %v394_v16 = vld [vmem:[#allocation7 + $0x80] sm:$0xff] }
  0xad   :  { %576 = vmatprep.subr.mxu0 %v752_v1  ;;  %634 = vmatpush3.msra.mxu1 %v395_v15 }
  0xae   :  { %577 = vmatpush3.msra.mxu0 %v287_v17  ;;  %635 = vmatprep.subr.mxu1 %v752_v1 }
  0xaf   :  { %578 = vmatprep.subr.mxu0 %v752_v1  ;;  %636 = vmatpush3.msra.mxu1 %v394_v16 }
  0xb0   :  { %579 = vmatpush3.msra.mxu0 %v286_v18 }
  0xb1   :  { %580 = vmatprep.subr.mxu0 %v752_v1 }
  0xb2   :  { %581 = vmatpush3.msra.mxu0 %v285_v19 }
  0xb3   :  { %582 = vmatprep.subr.mxu0 %v752_v1 }
  0xb4   :  { %583 = vmatpush3.msra.mxu0 %v284_v20 }
  0xb5   :  { %584 = vmatprep.subr.mxu0 %v752_v1 }
  0xb6   :  { %585 = vmatpush3.msra.mxu0 %v283_v21 }
  0xb7   :  { %586 = vmatprep.subr.mxu0 %v752_v1 }
  0xb8   :  { %587 = vmatpush3.msra.mxu0 %v282_v22 }
  0xb9   :  { %588 = vmatprep.subr.mxu0 %v752_v1 }
  0xba   :  { %589 = vmatpush3.msra.mxu0 %v281_v23 }
  0xbb   :  { %590 = vmatprep.subr.mxu0 %v752_v1 }
  0xbc   :  { %591 = vmatpush3.msra.mxu0 %v280_v24 }
  0xbd   :  { %592 = vmatprep.subr.mxu0 %v752_v1 }
  0xbe   :  { %593 = vmatpush3.msra.mxu0 %v279_v25 }
  0xbf   :  { %594 = vmatprep.subr.mxu0 %v752_v1 }
  0xc0   :  { %595 = vmatpush3.msra.mxu0 %v278_v26 }
  0xc1   :  { %596 = vmatprep.subr.mxu0 %v752_v1 }
  0xc2   :  { %597 = vmatpush3.msra.mxu0 %v277_v27 }
  0xc3   :  { %598 = vmatprep.subr.mxu0 %v752_v1 }
  0xc4   :  { %599 = vmatpush3.msra.mxu0 %v276_v28 }
  0xc5   :  { %600 = vmatprep.subr.mxu0 %v752_v1 }
  0xc6   :  { %601 = vmatpush3.msra.mxu0 %v275_v29 }
  0xed   :  { %v237_v30 = vpop.f32.mrf.mxu1 }
  0xef   :  { %v239_v18 = vpop.f32.mrf.mxu1 }
 0x167   :  { %v162_v31 = vpop.f32.mrf.mxu0 }
 0x168   :  { %v238_v32 = vadd.f32 %v237_v30, %v162_v31 }
 0x169   :  { %v164_v17 = vpop.f32.mrf.mxu0 }
 0x16a   :  { %v242_v33 = vrot.slane %v238_v32, 4  ;;  %v240_v19 = vadd.f32 %v239_v18, %v164_v17 }
 0x16c   :  { %v243_v34 = vadd.f32 %v242_v33, %v238_v32 }
 0x16e   :  { %v244_v35 = vrot.slane %v243_v34, 2 }
 0x170   :  { %v245_v36 = vadd.f32 %v244_v35, %v243_v34 }
 0x172   :  { %v246_v37 = vrot.slane %v245_v36, 1 }
 0x174   :  { %v247_v38 = vadd.f32 %v246_v37, %v245_v36 }
 0x176   :  { %v249_v39 = vmul.f32 0.125, %v247_v38 }
 0x178   :  { %v250_v40 = vsub.f32 %v238_v32, %v249_v39 }
 0x17a   :  { %v251_v41 = vmul.f32 %v250_v40, %v250_v40 }
 0x17c   :  { %v252_v42 = vrot.slane %v251_v41, 4 }
 0x17e   :  { %v253_v43 = vadd.f32 %v252_v42, %v251_v41  ;;  %v67_v42 = vld [vmem:[%s888_s5 + $0x4] sm:$0x1] }
 0x180   :  { %v254_v44 = vrot.slane %v253_v43, 2 }
 0x182   :  { %v255_v45 = vadd.f32 %v254_v44, %v253_v43 }
 0x184   :  { %v256_v46 = vrot.slane %v255_v45, 1 }
 0x186   :  { %v257_v47 = vadd.f32 %v256_v46, %v255_v45 }
 0x188   :  { %v258_v48 = vmul.f32 0.125, %v257_v47 }
 0x18a   :  { %v259_v49 = vadd.f32 1e-05, %v258_v48 }
 0x18c   :  { %654 = vrsqrt.f32 %v259_v49 }
 0x199   :  { %v655_v53 = vpop.eup %654 }
 0x19a   :  { %v261_v54 = vmul.f32 %v655_v53, %v64_v51  ;;  %v69_v51 = vld [vmem:[%s888_s5 + $0x6] sm:$0x1]  ;;  %v534_v53 = vld [vmem:[%s888_s5] ss:$0 sm:$0xff] }
 0x19b   :  { %494 = vperm.xlu1 %652, %v69_v51  }
 0x19c   :  { %v262_v56 = vmul.f32 %v261_v54, %v249_v39  ;;  %v267_v57 = vrot.slane %v261_v54, %v838_v52  ;;  %v66_v39 = vld [vmem:[%s888_s5 + $0x3] sm:$0x1] }
 0x19e   :  { %v263_v58 = vsub.f32 %v65_v55, %v262_v56  ;;  %v268_v59 = vmul.f32 %v267_v57, %v238_v32  ;;  %v535_v57 = vld [vmem:[%s888_s5 + $0x5] ss:$0 sm:$0xff]  ;;  %s718_s5 = scalar_lea.vmem %s520_s30, 16 }
 0x19f   :  { %p719_p1 = scmp.ne.s32.totalorder %s520_s30, %s718_s5  ;;  %p724_p3 = scmp.lt.s32.totalorder %s722_s7, %s718_s5 }
 0x1a0   :  { %v272_v60 = vrot.slane %v263_v58, %v838_v52 }
 0x1a1   :  { %p725_p4 = por %p724_p3, %p723_p2 }
 0x1a2   :  { %v273_v61 = vadd.f32 %v272_v60, %v268_v59 }
 0x1a3   :  { %p726_p5 = pnand %p725_p4, %p719_p1 }
 0x1a4   :  { %v274_v62 = vmax.f32 %v273_v61, 0.0 }
 0x1a6   :  { %603 = vmatmul.mubr.f32.vlgmr.msra.gmra.mxu0 %v274_v62 }
 0x216   :  { %v495_v60 = vpop.permute.xlu1 %494 }
 0x217   :  { %v499_v61 = vrot.slane %v495_v60, %v838_v52 }
 0x266   :  { %v357_v20 = vpop.f32.mrf.mxu0 }
 0x267   :  { %v358_v21 = vadd.f32 %v357_v20, %v240_v19 }
 0x268   :  { %v604_v22 = vpop.f32.mrf.mxu0 }
 0x269   :  { %v361_v23 = vrot.slane %v358_v21, 4 }
 0x26b   :  { %v362_v24 = vadd.f32 %v361_v23, %v358_v21 }
 0x26d   :  { %v363_v25 = vrot.slane %v362_v24, 2 }
 0x26f   :  { %v364_v26 = vadd.f32 %v363_v25, %v362_v24 }
 0x271   :  { %v365_v27 = vrot.slane %v364_v26, 1 }
 0x273   :  { %v366_v28 = vadd.f32 %v365_v27, %v364_v26 }
 0x275   :  { %v367_v29 = vmul.f32 0.125, %v366_v28 }
 0x277   :  { %v368_v30 = vsub.f32 %v358_v21, %v367_v29 }
 0x279   :  { %v369_v31 = vmul.f32 %v368_v30, %v368_v30 }
 0x27b   :  { %v370_v32 = vrot.slane %v369_v31, 4 }
 0x27d   :  { %v371_v33 = vadd.f32 %v370_v32, %v369_v31 }
 0x27f   :  { %v372_v34 = vrot.slane %v371_v33, 2 }
 0x281   :  { %v373_v1 = vadd.f32 %v372_v34, %v371_v33 }
 0x283   :  { %v374_v35 = vrot.slane %v373_v1, 1 }
 0x285   :  { %v375_v36 = vadd.f32 %v374_v35, %v373_v1 }
 0x287   :  { %v376_v37 = vmul.f32 0.125, %v375_v36 }
 0x289   :  { %v377_v38 = vadd.f32 1e-05, %v376_v37 }
 0x28b   :  { %656 = vrsqrt.f32 %v377_v38 }
 0x298   :  { %v657_v40 = vpop.eup %656 }
 0x299   :  { %v379_v41 = vmul.f32 %v657_v40, %v66_v39 }
 0x29b   :  { %v380_v43 = vmul.f32 %v379_v41, %v367_v29  ;;  %v385_v44 = vrot.slane %v379_v41, %v838_v52 }
 0x29d   :  { %v381_v45 = vsub.f32 %v67_v42, %v380_v43  ;;  %v386_v46 = vmul.f32 %v385_v44, %v358_v21 }
 0x29f   :  { %v390_v47 = vrot.slane %v381_v45, %v838_v52 }
 0x2a1   :  { %v391_v48 = vadd.f32 %v390_v47, %v386_v46 }
 0x2a3   :  { %v392_v49 = vmax.f32 %v391_v48, 0.0 }
 0x2a5   :  { %638 = vmatmul.mubr.f32.vlgmr.msra.gmra.mxu1 %v392_v49 }
 0x365   :  { %v480_v54 = vpop.f32.mrf.mxu1 }
 0x366   :  { %v481_v55 = vadd.f32 %v534_v53, %v480_v54 }
 0x367   :  { %v639_v56 = vpop.f32.mrf.mxu1 }
 0x368   :  { %v484_v58 = vmax.f32 %v481_v55, 0.0 }
 0x36a   :  { %v489_v59 = vmul.f32 %v535_v57, %v484_v58 }
 0x36c   :  { %490 = vadd.xlane.f32.xlu0 %v489_v59 }
 0x3f5   :  { %v491_v62 = vpop.xlane.xlu0 %490 }
 0x3f6   :  { %v501_v63 = vadd.f32 %v499_v61, %v491_v62 }
 0x3f8   :  { %504 = vperm.xlu1 %652, %v501_v63  }
 0x473   :  { %v505_v2 = vpop.permute.xlu1 %504 }
 0x474   :  { %v509_v3 = vrot.slane %v505_v2, %v508_v0 }
 0x476   :  { %512 = vst.msk [vmem:[#allocation8] sm:$0x1] %vm511_vm5, %v509_v3 }
 0x477   :  { %729 = shalt.err (!%p726_p5)
}
 0x478   :  { %522 = dma.vmem_to_hbm [thread:$0]  %s520_s30, 16, %s889_s6, [#allocation4]  }
 0x479   :  { %742 = dma.done.wait [#allocation4], 16  }
 0x47a   :  { %743 = vsyncadd [#allocation4], 4294967280 }
 0x47b   :  { %526 = vsyncpa [#allocation3], 1 }
 0x47c   :  { %527 = vsyncpa [#allocation6], 1 }
 0x47d   :  { %528 = vsyncpa [#allocation4], 1 }

</bundles_post_ra>
